<compile_context>
chip_gen: v7x
topology: tpu7x:2x2x1
jax: 0.10.0
libtpu: 0.0.40
codegen_flags: <defaults>
</compile_context>

<pallas_src>
import math

import jax
import jax.numpy as jnp
from jax.experimental import pallas as pl
from jax.experimental.pallas import tpu as pltpu


# ----------------------------- parameter init -----------------------------

def _xavier_uniform(key, shape):
    fan_in, fan_out = shape[0], shape[1]
    a = math.sqrt(6.0 / (fan_in + fan_out))
    return jax.random.uniform(key, shape, jnp.float32, minval=-a, maxval=a)


def init_params(key, rows, cols):
    ks = jax.random.split(key, 7)
    return {
        # TopK scorer
        "scorer": _xavier_uniform(ks[0], (rows, 1)),
        # update gate
        "Wu": _xavier_uniform(ks[1], (rows, rows)),
        "Uu": _xavier_uniform(ks[2], (rows, rows)),
        "bu": jnp.zeros((rows, cols), jnp.float32),
        # reset gate
        "Wr": _xavier_uniform(ks[3], (rows, rows)),
        "Ur": _xavier_uniform(ks[4], (rows, rows)),
        "br": jnp.zeros((rows, cols), jnp.float32),
        # htilda gate
        "Wh": _xavier_uniform(ks[5], (rows, rows)),
        "Uh": _xavier_uniform(ks[6], (rows, rows)),
        "bh": jnp.zeros((rows, cols), jnp.float32),
    }


# ------------------------------ Pallas kernel ------------------------------
# Fused mat-GRU cell, transposed layout:
#   zT, qT : (C, R)   activations, lane dim = R
#   wT     : (R, 3R)  == concat([Wu, Wr, Wh], axis=0).T
#   uT     : (R, 2R)  == concat([Uu, Ur], axis=0).T
#   uhT    : (R, R)   == Uh.T
#   bT     : (C, 3R)  == concat([bu.T, br.T, bh.T], axis=1)
#   out    : (C, R)   == new_Q.T

def _gru_cell_kernel(z_ref, q_ref, wT_ref, uT_ref, uhT_ref, bT_ref, out_ref):
    R = q_ref.shape[1]
    z = z_ref[...]                                           # (C, R)
    q = q_ref[...]                                           # (C, R)

    # 3 MXU matmuls total (was 6).
    wz = jnp.dot(z, wT_ref[...], preferred_element_type=jnp.float32) + bT_ref[...]  # (C, 3R)
    uq = jnp.dot(q, uT_ref[...], preferred_element_type=jnp.float32)                # (C, 2R)

    update = jax.nn.sigmoid(wz[:, 0:R] + uq[:, 0:R])
    reset = jax.nn.sigmoid(wz[:, R:2 * R] + uq[:, R:2 * R])

    h_gated = reset * q
    h_cap = jnp.tanh(
        wz[:, 2 * R:3 * R]
        + jnp.dot(h_gated, uhT_ref[...], preferred_element_type=jnp.float32))

    out_ref[...] = (1.0 - update) * q + update * h_cap


_VMEM_SPEC = pl.BlockSpec(memory_space=pltpu.MemorySpace.VMEM)


# ------------------------------- forward pass ------------------------------

def choose_topk_t(prev_Z, mask, scorer, k):
    """TopK module.  Scoring / top-k / gather stay in plain XLA: the score
    matmul is a few-KFLOP, lane-width-1 op that XLA fuses with top_k for free.
    Returns z_topk ALREADY transposed: shape (k, rows) == (cols, rows)."""
    scorer_n = scorer / jnp.linalg.norm(scorer)
    scores = prev_Z @ scorer_n + mask                        # (N, 1)

    flat = scores.reshape(-1)
    vals, idx = jax.lax.top_k(flat, k)
    # topk_indices = topk_indices[vals > -inf]; pad_with_last_val if short
    valid = vals > -jnp.inf
    n_valid = jnp.sum(valid.astype(jnp.int32))
    last = idx[jnp.maximum(n_valid - 1, 0)]
    idx = jnp.where(valid, idx, last)

    sel = jnp.take(prev_Z, idx, axis=0)                      # (k, rows)
    gate = jnp.tanh(jnp.take(flat, idx).reshape(-1, 1))      # (k, 1)
    return sel * gate                                        # (k, rows)


def mat_gru_cell_forward(params, prev_Q, prev_Z, mask):
    R, C = prev_Q.shape

    zT = choose_topk_t(prev_Z, mask, params["scorer"], C)    # (C, R)
    qT = prev_Q.T                                            # (C, R)

    # Stack / transpose weights wrapper-side so the kernel does 3 matmuls.
    wT = jnp.concatenate([params["Wu"], params["Wr"], params["Wh"]], axis=0).T  # (R, 3R)
    uT = jnp.concatenate([params["Uu"], params["Ur"]], axis=0).T                # (R, 2R)
    uhT = params["Uh"].T                                                        # (R, R)
    bT = jnp.concatenate(
        [params["bu"].T, params["br"].T, params["bh"].T], axis=1)               # (C, 3R)

    # TODO(synk): if R grows large (~1k+), add a row-tile grid ("parallel") and
    # a K-reduction axis with an f32 accumulator so the stacked weights are not
    # whole-array VMEM-resident (v7x has only 64 MiB VMEM, 2 TCs).
    new_QT = pl.pallas_call(
        _gru_cell_kernel,
        out_shape=jax.ShapeDtypeStruct((C, R), jnp.float32),
        in_specs=[_VMEM_SPEC] * 6,
        out_specs=_VMEM_SPEC,
    )(zT, qT, wT, uT, uhT, bT)

    return new_QT.T                                          # (R, C)


# ------------------------------ reference check ----------------------------

def mat_gru_cell_reference(params, prev_Q, prev_Z, mask):
    s = params["scorer"]
    scores = prev_Z @ s / jnp.linalg.norm(s) + mask
    flat = scores.reshape(-1)
    k = prev_Q.shape[1]
    vals, idx = jax.lax.top_k(flat, k)
    valid = vals > -jnp.inf
    n_valid = jnp.sum(valid.astype(jnp.int32))
    last = idx[jnp.maximum(n_valid - 1, 0)]
    idx = jnp.where(valid, idx, last)
    z_topk = (prev_Z[idx] * jnp.tanh(flat[idx].reshape(-1, 1))).T

    upd = jax.nn.sigmoid(params["Wu"] @ z_topk + params["Uu"] @ prev_Q + params["bu"])
    rst = jax.nn.sigmoid(params["Wr"] @ z_topk + params["Ur"] @ prev_Q + params["br"])
    h_cap = jnp.tanh(params["Wh"] @ z_topk + params["Uh"] @ (rst * prev_Q) + params["bh"])
    return (1.0 - upd) * prev_Q + upd * h_cap


# ----------------------------------- main -----------------------------------

if __name__ == "__main__":
    rows, cols, num_nodes = 32, 8, 64  # args.rows, args.cols (= k), #nodes

    key = jax.random.PRNGKey(0)
    k_param, k_q, k_z = jax.random.split(key, 3)

    params = init_params(k_param, rows, cols)
    prev_Q = jax.random.normal(k_q, (rows, cols), jnp.float32)
    prev_Z = jax.random.normal(k_z, (num_nodes, rows), jnp.float32)
    mask = jnp.zeros((num_nodes, 1), jnp.float32)

    fwd = jax.jit(mat_gru_cell_forward)
    new_Q = fwd(params, prev_Q, prev_Z, mask)
    jax.block_until_ready(new_Q)

    ref = mat_gru_cell_reference(params, prev_Q, prev_Z, mask)
    assert new_Q.shape == (rows, cols)
    assert jnp.allclose(new_Q, ref, atol=1e-4, rtol=1e-4)

    print("KERNEL_OK")
</pallas_src>

<mosaic_0001>
module attributes {stable_mosaic.version = 11 : i64} {
  func.func @_gru_cell_kernel(%arg0: memref<8x32xf32, #tpu.memory_space<vmem>>, %arg1: memref<8x32xf32, #tpu.memory_space<vmem>>, %arg2: memref<32x96xf32, #tpu.memory_space<vmem>>, %arg3: memref<32x64xf32, #tpu.memory_space<vmem>>, %arg4: memref<32x32xf32, #tpu.memory_space<vmem>>, %arg5: memref<8x96xf32, #tpu.memory_space<vmem>>, %arg6: memref<8x32xf32, #tpu.memory_space<vmem>>) attributes {dimension_semantics = [], scalar_prefetch = 0 : i64, scratch_operands = 0 : i64, tpu.core_type = #tpu.core_type<tc>} {
    %c0 = arith.constant 0 : index
    %c0_0 = arith.constant 0 : index
    %0 = vector.load %arg0[%c0, %c0_0] : memref<8x32xf32, #tpu.memory_space<vmem>>, vector<8x32xf32>
    %c0_1 = arith.constant 0 : index
    %c0_2 = arith.constant 0 : index
    %1 = vector.load %arg1[%c0_1, %c0_2] : memref<8x32xf32, #tpu.memory_space<vmem>>, vector<8x32xf32>
    %c0_3 = arith.constant 0 : index
    %c0_4 = arith.constant 0 : index
    %2 = vector.load %arg2[%c0_3, %c0_4] : memref<32x96xf32, #tpu.memory_space<vmem>>, vector<32x96xf32>
    %cst = arith.constant dense<0.000000e+00> : vector<8x96xf32>
    %3 = tpu.matmul %0, %2, %cst {dimension_numbers = #tpu.dot_dimension_numbers<[1], [0], [0], [1], [0, 0, 1, 1], [], []>} : vector<8x32xf32>, vector<32x96xf32>, vector<8x96xf32> -> vector<8x96xf32>
    %c0_5 = arith.constant 0 : index
    %c0_6 = arith.constant 0 : index
    %4 = vector.load %arg5[%c0_5, %c0_6] : memref<8x96xf32, #tpu.memory_space<vmem>>, vector<8x96xf32>
    %5 = arith.addf %3, %4 : vector<8x96xf32>
    %c0_7 = arith.constant 0 : index
    %c0_8 = arith.constant 0 : index
    %6 = vector.load %arg3[%c0_7, %c0_8] : memref<32x64xf32, #tpu.memory_space<vmem>>, vector<32x64xf32>
    %cst_9 = arith.constant dense<0.000000e+00> : vector<8x64xf32>
    %7 = tpu.matmul %1, %6, %cst_9 {dimension_numbers = #tpu.dot_dimension_numbers<[1], [0], [0], [1], [0, 0, 1, 1], [], []>} : vector<8x32xf32>, vector<32x64xf32>, vector<8x64xf32> -> vector<8x64xf32>
    %8 = vector.extract_strided_slice %5 {offsets = [0, 0], sizes = [8, 32], strides = [1, 1]} : vector<8x96xf32> to vector<8x32xf32>
    %9 = vector.extract_strided_slice %7 {offsets = [0, 0], sizes = [8, 32], strides = [1, 1]} : vector<8x64xf32> to vector<8x32xf32>
    %10 = arith.addf %8, %9 : vector<8x32xf32>
    %11 = arith.negf %10 : vector<8x32xf32>
    %12 = math.exp %11 : vector<8x32xf32>
    %cst_10 = arith.constant 1.000000e+00 : f32
    %13 = vector.broadcast %cst_10 : f32 to vector<8x32xf32>
    %14 = arith.addf %13, %12 : vector<8x32xf32>
    %15 = arith.divf %13, %14 : vector<8x32xf32>
    %16 = vector.extract_strided_slice %5 {offsets = [0, 32], sizes = [8, 32], strides = [1, 1]} : vector<8x96xf32> to vector<8x32xf32>
    %17 = vector.extract_strided_slice %7 {offsets = [0, 32], sizes = [8, 32], strides = [1, 1]} : vector<8x64xf32> to vector<8x32xf32>
    %18 = arith.addf %16, %17 : vector<8x32xf32>
    %19 = arith.negf %18 : vector<8x32xf32>
    %20 = math.exp %19 : vector<8x32xf32>
    %cst_11 = arith.constant 1.000000e+00 : f32
    %21 = vector.broadcast %cst_11 : f32 to vector<8x32xf32>
    %22 = arith.addf %21, %20 : vector<8x32xf32>
    %23 = arith.divf %21, %22 : vector<8x32xf32>
    %24 = arith.mulf %23, %1 : vector<8x32xf32>
    %25 = vector.extract_strided_slice %5 {offsets = [0, 64], sizes = [8, 32], strides = [1, 1]} : vector<8x96xf32> to vector<8x32xf32>
    %c0_12 = arith.constant 0 : index
    %c0_13 = arith.constant 0 : index
    %26 = vector.load %arg4[%c0_12, %c0_13] : memref<32x32xf32, #tpu.memory_space<vmem>>, vector<32x32xf32>
    %cst_14 = arith.constant dense<0.000000e+00> : vector<8x32xf32>
    %27 = tpu.matmul %24, %26, %cst_14 {dimension_numbers = #tpu.dot_dimension_numbers<[1], [0], [0], [1], [0, 0, 1, 1], [], []>} : vector<8x32xf32>, vector<32x32xf32>, vector<8x32xf32> -> vector<8x32xf32>
    %28 = arith.addf %25, %27 : vector<8x32xf32>
    %29 = math.tanh %28 : vector<8x32xf32>
    %cst_15 = arith.constant 1.000000e+00 : f32
    %30 = vector.broadcast %cst_15 : f32 to vector<8x32xf32>
    %31 = arith.subf %30, %15 : vector<8x32xf32>
    %32 = arith.mulf %31, %1 : vector<8x32xf32>
    %33 = arith.mulf %15, %29 : vector<8x32xf32>
    %34 = arith.addf %32, %33 : vector<8x32xf32>
    %c0_16 = arith.constant 0 : index
    %c0_17 = arith.constant 0 : index
    %35 = vector.load %arg6[%c0_16, %c0_17] : memref<8x32xf32, #tpu.memory_space<vmem>>, vector<8x32xf32>
    tpu.vector_store %arg6[%c0_16, %c0_17], %34 {strides = array<i32>} : memref<8x32xf32, #tpu.memory_space<vmem>>, vector<8x32xf32>,
    return
  }
}

</mosaic_0001>

<bundles_post_ra>
// kernel: mat_gru_cell_forward.1
= control target key start
LH: loop header
LB: loop body
LE: loop exit
PB: predicated region body
PF: predicated region fallthrough
CT: control target
= control target key end

     0   :  { %v408_v3 = vmov 0.0|0.0   ;;  %vm409_vm0 = vmmov 0   ;;  %v410_v11 = vmov 0.0   ;;  %s514_s0 = inlined_call_operand.vmem [shape: f32[8,32], index: 0, kind: input, shape index: {}]   ;;  %s515_s1 = inlined_call_operand.vmem [shape: f32[8,32], index: 1, kind: input, shape index: {}]   ;;  %s516_s2 = inlined_call_operand.vmem [shape: f32[32,96], index: 2, kind: input, shape index: {}]   ;;  %s517_s3 = inlined_call_operand.vmem [shape: f32[32,64], index: 3, kind: input, shape index: {}]   ;;  %s518_s4 = inlined_call_operand.vmem [shape: f32[32,32], index: 4, kind: input, shape index: {}]   ;;  %s519_s5 = inlined_call_operand.vmem [shape: f32[8,96], index: 5, kind: input, shape index: {}]   ;;  %s520_s6 = inlined_call_operand.hbm [shape: f32[8,32], index: 6, kind: output, shape index: {}]  }
   0x1   :  { %v26_v0 = vld [vmem:[%s516_s2] sm:$0xff]  ;;  %v27_v1 = vld [vmem:[%s516_s2 + $0x8] sm:$0xff]  ;;  %353 = vmatprep.subr.bf16.mxu0 %v408_v3  ;;  %359 = vmatprep.subr.bf16.mxu1 %v408_v3  ;;  %v28_v6 = vld [vmem:[%s516_s2 + $0x10] sm:$0xff] }
   0x2   :  { %v105_v2 = vld [vmem:[%s517_s3] sm:$0xff]  ;;  %v354_v4 = vpack.c.bf16 %v27_v1, %v26_v0  ;;  %v106_v5 = vld [vmem:[%s517_s3 + $0x8] sm:$0xff]  ;;  %v29_v7 = vld [vmem:[%s516_s2 + $0x18] sm:$0xff]  ;;  %328 = vmatprep.mubr.msk.f32.mxu0 %vm409_vm0, %v410_v11  ;;  %339 = vmatprep.mubr.msk.f32.mxu1 %vm409_vm0, %v410_v11 }
   0x3   :  { %v360_v8 = vpack.c.bf16 %v106_v5, %v105_v2  ;;  %v107_v9 = vld [vmem:[%s517_s3 + $0x10] sm:$0xff]  ;;  %v108_v10 = vld [vmem:[%s517_s3 + $0x18] sm:$0xff]  ;;  %v357_v12 = vpack.c.bf16 %v29_v7, %v28_v6 }
   0x4   :  { %355 = vmatpush3.bf16.msra.mxu0 %v354_v4 }
   0x5   :  { %11 = vsyncpa [#allocation3], 0  ;;  %361 = vmatpush3.bf16.msra.mxu1 %v360_v8  ;;  %356 = vmatprep.subr.bf16.mxu0 %v408_v3  ;;  %v363_v13 = vpack.c.bf16 %v108_v10, %v107_v9  ;;  %v25_v14 = vld [vmem:[%s515_s1] sm:$0xff]  ;;  %s411_s14 = smov 32   ;;  %vm31_vm1 = vcmask 261120   ;;  %v194_v17 = vld [vmem:[%s518_s4 + $0x8] sm:$0xff] }
   0x6   :  { %362 = vmatprep.subr.bf16.mxu1 %v408_v3  ;;  %189 = vrot.lane.b32.xlu0 %v25_v14, %s411_s14  ;;  %v24_v15 = vld [vmem:[%s514_s0] sm:$0xff]  ;;  %v195_v18 = vld [vmem:[%s518_s4 + $0x10] sm:$0xff]  ;;  %v196_v20 = vld [vmem:[%s518_s4 + $0x18] sm:$0xff]  ;;  %s414_s24 = smov [#allocation2]  }
   0x7   :  { %v193_v16 = vld [vmem:[%s518_s4] sm:$0xff]  ;;  %v369_v21 = vpack.c.bf16 %v196_v20, %v195_v18  ;;  %s412_s4 = smov 96   ;;  %s293_s25 = sshll.u32 %s414_s24, 4  ;;  %s294_s25 = int_to_ptr.vmem [resolvable:$true] %s293_s25 }
   0x8   :  { %358 = vmatpush3.bf16.msra.mxu0 %v357_v12  ;;  %v366_v19 = vpack.c.bf16 %v194_v17, %v193_v16  ;;  %v30_v22 = vld [vmem:[%s519_s5] sm:$0xff]  ;;  %s413_s5 = smov 64   ;;  %s384_s26 = scalar_lea.vmem %s294_s25, 128 }
   0x9   :  { %364 = vmatpush3.bf16.msra.mxu1 %v363_v13  ;;  %365 = vmatprep.subr.bf16.mxu0 %v408_v3  ;;  %p385_p0 = scmp.ne.s32.totalorder %s294_s25, %s384_s26  ;;  %p389_p1 = scmp.lt.s32.totalorder %s294_s25, %s294_s25 }
   0xa   :  { %p390_p2 = scmp.lt.s32.totalorder %s384_s26, %s384_s26 }
   0xb   :  { %329 = vmatmul.mubr.msk.f32.vlgmr.msra.gmra.mrb[0].mxu0 %vm31_vm1, %v24_v15 }
   0xc   :  { %340 = vmatmul.mubr.msk.f32.vlgmr.msra.gmra.mrb[0].mxu1 %vm31_vm1, %v25_v14  ;;  %350 = vmatprep.mubr.msk.f32.mxu0 %vm409_vm0, %v410_v11  ;;  %p391_p3 = por %p390_p2, %p389_p1 }
   0xd   :  { %367 = vmatpush3.bf16.msra.mxu0 %v366_v19 }
   0xe   :  { %368 = vmatprep.subr.bf16.mxu0 %v408_v3  ;;  %p392_p4 = pnand %p391_p3, %p385_p0 }
  0x11   :  { %370 = vmatpush3.bf16.msra.mxu0 %v369_v21 }
  0x78   :  { %v190_v32 = vpop.permute.xlu0 %189 }
  0xde   :  { %v101_v23 = vpop.f32.mrb[0].mxu0 }
  0xdf   :  { %v102_v24 = vadd.f32 %v101_v23, %v30_v22  ;;  %v330_v25 = vpop.f32.mrb[1].mxu0  ;;  %v178_v26 = vpop.f32.mrb[0].mxu1 }
  0xe0   :  { %v341_v27 = vpop.f32.mrb[1].mxu1 }
  0xe1   :  { %v182_v28 = vadd.f32 %v178_v26, %v102_v24 }
  0xe3   :  { %v303_v29 = vmul.f32 -1.442695, %v182_v28 }
  0xe5   :  { %378 = vpow2.f32 %v303_v29 }
  0xef   :  { %v379_v30 = vpop.eup %378 }
  0xf0   :  { %v186_v31 = vadd.f32 1.0, %v379_v30 }
  0xf2   :  { %380 = vrcp.f32 %v186_v31 }
  0xfc   :  { %v381_v33 = vpop.eup %380 }
  0xfd   :  { %v192_v34 = vmul.f32 %v381_v33, %v190_v32  ;;  %v278_v41 = vsub.f32 1.0, %v381_v33 }
  0xff   :  { %198 = vrot.lane.b32.xlu0 %v192_v34, %s412_s4  ;;  %v279_v43 = vmul.f32 %v278_v41, %v25_v14 }
 0x171   :  { %v199_v35 = vpop.permute.xlu0 %198 }
 0x172   :  { %351 = vmatmul.mubr.msk.f32.vlgmr.msra.gmra.mrb[2].mxu0 %vm31_vm1, %v199_v35 }
 0x245   :  { %v268_v36 = vpop.f32.mrb[2].mxu0 }
 0x246   :  { %273 = vrot.lane.b32.xlu1 %v268_v36, %s413_s5  ;;  %v352_v37 = vpop.f32.mrb[3].mxu0 }
 0x2b8   :  { %v274_v38 = vpop.permute.xlu1 %273 }
 0x2b9   :  { %v276_v39 = vadd.f32 %v274_v38, %v102_v24 }
 0x2bb   :  { %382 = vtanh.f32 %v276_v39 }
 0x2c5   :  { %v383_v40 = vpop.eup %382 }
 0x2c6   :  { %281 = vrot.lane.b32.xlu1 %v383_v40, %s413_s5 }
 0x338   :  { %v282_v42 = vpop.permute.xlu1 %281 }
 0x339   :  { %v284_v44 = vmul.f32 %v381_v33, %v282_v42 }
 0x33b   :  { %v285_v45 = vadd.f32 %v284_v44, %v279_v43 }
 0x33d   :  { %286 = vst.msk [vmem:[#allocation2] sm:$0xff] %vm31_vm1, %v285_v45 }
 0x33e   :  { %395 = shalt.err (!%p392_p4)
}
 0x33f   :  { %s396_s29 = scalar_lea.hbm %s520_s6, 128 }
 0x340   :  { %p397_p5 = scmp.ne.s32.totalorder %s520_s6, %s396_s29  ;;  %p400_p6 = scmp.lt.u32.totalorder %s396_s29, %s520_s6 }
 0x342   :  { %p402_p7 = pnand %p400_p6, %p397_p5 }
 0x344   :  { %405 = shalt.err (!%p402_p7)
}
 0x345   :  { %296 = dma.vmem_to_hbm [thread:$0]  %s294_s25, 128, %s520_s6, [#allocation3]  }
 0x346   :  { %406 = dma.done.wait [#allocation3], 128  }
 0x347   :  { %407 = vsyncadd [#allocation3], 4294967168 }
 0x348   :  { %300 = vsyncpa [#allocation3], 1 }

</bundles_post_ra>
